<compile_context>
chip_gen: v7x
topology: tpu7x:2x2x1
jax: 0.10.0
libtpu: 0.0.40
codegen_flags: <defaults>
</compile_context>

<pallas_src>
import functools

import jax
import jax.numpy as jnp
from jax.experimental import pallas as pl
from jax.experimental.pallas import tpu as pltpu

LEAKY_SLOPE = 0.01
BN_EPS = 1e-5
NORM_EPS = 1e-12


def _normalize_rows(x):
    # F.normalize(dim=1): x / max(||x||, eps) == x * rsqrt(max(||x||^2, eps^2))
    ss = jnp.sum(x * x, axis=1, keepdims=True)
    return x * jax.lax.rsqrt(jnp.maximum(ss, NORM_EPS * NORM_EPS))


def _leaky_relu(h):
    return jnp.where(h >= 0, h, LEAKY_SLOPE * h)


def mlp_kernel(x_ref, w1_ref, w2_ref, w3_ref, b3_ref, vec_ref,
               out_ref, stats_ref, *opt_scratch,
               n_rows, tile_n, needs_mask, cache_hidden):
    """Grid = (phase, row_tile), both sequential.

    phase 0: h1 = Linear1(normalize(x)); accumulate BN1 batch stats;
             (cached path) stash h1 in the batch-wide VMEM cache.
    phase 1: BN1 + LeakyReLU + Linear2 -> h2; accumulate BN2 stats;
             (cached path) overwrite the cache slot with h2.
    phase 2: BN2 + LeakyReLU + Linear3 + softmax; write the output tile.

    BN statistics use shifted sums (shift = per-feature mean of tile 0), so
    the one-pass variance E[(h-s)^2] - E[h-s]^2 does not cancel badly.
    """
    hcache_ref = opt_scratch[0] if cache_hidden else None

    phase = pl.program_id(0)
    tile = pl.program_id(1)
    inv_n = 1.0 / float(n_rows)

    row_start = tile * tile_n
    if tile_n % 8 == 0:
        row_start = pl.multiple_of(row_start, 8)

    # Packed per-layer (1, H) vectors: b1, g1, beta1, b2, g2, beta2.
    b1, g1, be1 = vec_ref[0:1, :], vec_ref[1:2, :], vec_ref[2:3, :]
    b2, g2, be2 = vec_ref[3:4, :], vec_ref[4:5, :], vec_ref[5:6, :]

    @pl.when(jnp.logical_and(phase == 0, tile == 0))
    def _init():
        stats_ref[...] = jnp.zeros_like(stats_ref)

    # ---- helpers (traced only inside the phases that use them) -------------
    def valid_mask():
        row_id = row_start + jax.lax.broadcasted_iota(jnp.int32, (tile_n, 1), 0)
        return row_id < n_rows

    def compute_h1():
        x = x_ref[...].astype(jnp.float32)
        return jnp.dot(_normalize_rows(x), w1_ref[...],
                       preferred_element_type=jnp.float32) + b1

    def bn_stats(base):
        # mean = shift + E[h-shift]; var = E[(h-shift)^2] - (E[h-shift])^2
        shift = stats_ref[base:base + 1, :]
        m1 = stats_ref[base + 1:base + 2, :] * inv_n
        m2 = stats_ref[base + 2:base + 3, :] * inv_n
        return shift + m1, jnp.maximum(m2 - m1 * m1, 0.0)

    def bn_leaky(h, mean, var, g, be):
        return _leaky_relu((h - mean) * jax.lax.rsqrt(var + BN_EPS) * g + be)

    def accumulate(h, base):
        # Tile 0 is always fully valid (tn == n when single-tile, else the
        # first tile is full); its per-feature mean is the shift.
        @pl.when(tile == 0)
        def _():
            stats_ref[base:base + 1, :] = jnp.mean(h, axis=0, keepdims=True)
        d = h - stats_ref[base:base + 1, :]
        h_store = h
        if needs_mask:
            v = valid_mask()
            d = jnp.where(v, d, 0.0)
            h_store = jnp.where(v, h, 0.0)
        stats_ref[base + 1:base + 2, :] += jnp.sum(d, axis=0, keepdims=True)
        stats_ref[base + 2:base + 3, :] += jnp.sum(d * d, axis=0, keepdims=True)
        return h_store

    def compute_h2(h1):
        mean1, var1 = bn_stats(0)
        a1 = bn_leaky(h1, mean1, var1, g1, be1)
        return jnp.dot(a1, w2_ref[...], preferred_element_type=jnp.float32) + b2

    # ---- phase 0: layer-1 pre-activations + BN1 stats -----------------------
    @pl.when(phase == 0)
    def _phase0():
        h1 = accumulate(compute_h1(), 0)
        if cache_hidden:
            hcache_ref[pl.ds(row_start, tile_n), :] = h1

    # ---- phase 1: layer-2 pre-activations + BN2 stats -----------------------
    @pl.when(phase == 1)
    def _phase1():
        if cache_hidden:
            h1 = hcache_ref[pl.ds(row_start, tile_n), :]
        else:
            h1 = compute_h1()
        h2 = accumulate(compute_h2(h1), 3)
        if cache_hidden:
            hcache_ref[pl.ds(row_start, tile_n), :] = h2

    # ---- phase 2: BN2 + LeakyReLU + output layer + softmax ------------------
    @pl.when(phase == 2)
    def _phase2():
        if cache_hidden:
            h2 = hcache_ref[pl.ds(row_start, tile_n), :]
        else:
            h2 = compute_h2(compute_h1())
        mean2, var2 = bn_stats(3)
        a2 = bn_leaky(h2, mean2, var2, g2, be2)
        logits = jnp.dot(a2, w3_ref[...],
                         preferred_element_type=jnp.float32) + b3_ref[...]
        m = jnp.max(logits, axis=1, keepdims=True)
        e = jnp.exp(logits - m)
        denom = jnp.sum(e, axis=1, keepdims=True)
        out_ref[...] = (e * pl.reciprocal(denom, approx=True)).astype(out_ref.dtype)


def mlp_forward(x, w1, b1, g1, be1, w2, b2, g2, be2, w3, b3, *,
                tile_n=None, cache_hidden=None):
    """x: (N, d_in) float; linear weights pre-transposed to
    (in_features, out_features); biases / BN params shaped (1, features)."""
    n, d_in = x.shape
    hidden = w1.shape[1]
    d_out = w3.shape[1]

    # ---- hardware-aware sizing (VMEM: 128 MiB v5e/v6e, 64 MiB per-TC v7x) ---
    try:
        vmem_cap = int(pltpu.get_tpu_info().vmem_capacity_bytes)
    except Exception:
        vmem_cap = 64 << 20                  # conservative (v7x) fallback
    budget = (vmem_cap * 3) // 4             # headroom for compiler temporaries

    LANE = 128

    def row_bytes(cols):                      # lane-padded f32 bytes per row
        return max(pl.cdiv(cols, LANE), 1) * LANE * 4

    def step_bytes(rows):
        # x/out double buffers + a few (rows, hidden) f32 live intermediates.
        return rows * (2 * row_bytes(d_in) + 2 * row_bytes(d_out)
                       + 6 * row_bytes(hidden))

    if tile_n is None:
        # Bigger tiles amortize the ~0.35 us per-grid-step overhead; cap lower
        # on v7x (64 MiB VMEM).
        tile_n = 8192 if vmem_cap >= (100 << 20) else 4096
    if n > tile_n:
        assert tile_n % 8 == 0, "tile_n must be a multiple of 8 sublanes"
    tn = n if n <= tile_n else tile_n
    while tn > 8 and step_bytes(tn) > budget:  # only triggers for huge tiles
        tn = max(8, ((tn // 2) // 8) * 8)

    num_tiles = pl.cdiv(n, tn)
    padded_n = num_tiles * tn
    needs_mask = (n % tn) != 0

    # Batch-wide h1/h2 cache => x streamed from HBM exactly once; only enabled
    # when it fits the VMEM budget alongside the per-step buffers.
    cache_bytes = padded_n * row_bytes(hidden)
    if cache_hidden is None:
        cache_hidden = (step_bytes(tn) + cache_bytes) <= budget

    # Pack the six (1, hidden) vectors into one grid-invariant (6, hidden)
    # array -> fewer tiny param DMAs / BlockSpecs.
    vecs = jnp.concatenate([b1, g1, be1, b2, g2, be2], axis=0).astype(jnp.float32)

    def param_spec(shape):
        # Grid-invariant params: stay VMEM-resident across all grid steps.
        return pl.BlockSpec(shape, lambda p, i: (0, 0))

    if cache_hidden:
        # x tiles only move during phase 0 (block index frozen afterwards).
        x_map = lambda p, i: (jnp.where(p == 0, i, 0), 0)
    else:
        x_map = lambda p, i: (i, 0)
    # Output block index frozen at 0 for phases 0/1 so the (unwritten) out
    # buffer is never DMA'd back to HBM before phase 2 produces it.
    out_map = lambda p, i: (jnp.where(p < 2, 0, i), 0)

    scratch = [pltpu.VMEM((6, hidden), jnp.float32)]     # shifted BN stats
    if cache_hidden:
        scratch.append(pltpu.VMEM((padded_n, hidden), jnp.float32))

    kernel = functools.partial(mlp_kernel, n_rows=n, tile_n=tn,
                               needs_mask=needs_mask, cache_hidden=cache_hidden)

    return pl.pallas_call(
        kernel,
        out_shape=jax.ShapeDtypeStruct((n, d_out), jnp.float32),
        grid=(3, num_tiles),                              # (phase, row tile)
        in_specs=[
            pl.BlockSpec((tn, d_in), x_map),              # x (streamed tiles)
            param_spec((d_in, hidden)),                   # w1 (VMEM-resident)
            param_spec((hidden, hidden)),                 # w2
            param_spec((hidden, d_out)),                  # w3
            param_spec((1, d_out)),                       # b3
            param_spec((6, hidden)),                      # packed b/gamma/beta
        ],
        out_specs=pl.BlockSpec((tn, d_out), out_map),
        scratch_shapes=scratch,
        # Both axes sequential: phases are ordered and the row-tile axis
        # carries the cross-tile BatchNorm reduction through scratch.
        # TODO(synk): on v7x, shard the row-tile axis across both TensorCores
        # (core_parallel / pl.core_map) with a per-core BN-stats combine.
        compiler_params=pltpu.CompilerParams(
            dimension_semantics=("arbitrary", "arbitrary"),
            vmem_limit_bytes=int(budget)),
    )(x, w1, w2, w3, b3, vecs)


# ---------------------------------------------------------------------------
# Pure-JAX reference (straightforward translation of the PyTorch forward).
# ---------------------------------------------------------------------------
def mlp_reference(x, w1, b1, g1, be1, w2, b2, g2, be2, w3, b3):
    x = x.astype(jnp.float32)
    nrm = jnp.sqrt(jnp.sum(x * x, axis=1, keepdims=True))
    x = x / jnp.maximum(nrm, NORM_EPS)

    def bn(h, g, be):
        mean = jnp.mean(h, axis=0, keepdims=True)
        var = jnp.mean((h - mean) ** 2, axis=0, keepdims=True)
        return (h - mean) / jnp.sqrt(var + BN_EPS) * g + be

    h = _leaky_relu(bn(x @ w1 + b1, g1, be1))
    h = _leaky_relu(bn(h @ w2 + b2, g2, be2))
    logits = h @ w3 + b3
    return jax.nn.softmax(logits, axis=1)


def _linear_init(key, fan_in, fan_out):
    # PyTorch-style Linear init: U(-1/sqrt(fan_in), 1/sqrt(fan_in))
    kw, kb = jax.random.split(key)
    bound = 1.0 / float(fan_in) ** 0.5
    w = jax.random.uniform(kw, (fan_in, fan_out), jnp.float32, -bound, bound)
    b = jax.random.uniform(kb, (1, fan_out), jnp.float32, -bound, bound)
    return w, b


if __name__ == "__main__":
    key = jax.random.PRNGKey(0)
    D_IN, HIDDEN, D_OUT = 16, 32, 10

    kp, kx = jax.random.split(key)
    k1, k2, k3 = jax.random.split(kp, 3)
    w1, b1 = _linear_init(k1, D_IN, HIDDEN)
    w2, b2 = _linear_init(k2, HIDDEN, HIDDEN)
    w3, b3 = _linear_init(k3, HIDDEN, D_OUT)
    g1 = jnp.ones((1, HIDDEN), jnp.float32)
    be1 = jnp.zeros((1, HIDDEN), jnp.float32)
    g2 = jnp.ones((1, HIDDEN), jnp.float32)
    be2 = jnp.zeros((1, HIDDEN), jnp.float32)
    params = (w1, b1, g1, be1, w2, b2, g2, be2, w3, b3)

    configs = [
        (64, dict(tile_n=32)),                       # cached, even multi-tile
        (50, dict(tile_n=16)),                       # cached, partial last tile
        (50, dict(tile_n=16, cache_hidden=False)),   # streaming fallback path
        (64, dict()),                                # default: single tile
    ]
    for idx, (n, kw) in enumerate(configs):
        kx, sub = jax.random.split(kx)
        x = jax.random.normal(sub, (n, D_IN), jnp.float32)
        out = mlp_forward(x, *params, **kw)
        jax.block_until_ready(out)
        ref = mlp_reference(x, *params)
        assert out.shape == (n, D_OUT)
        err = float(jnp.max(jnp.abs(out - ref)))
        assert bool(jnp.allclose(out, ref, atol=2e-3, rtol=2e-3)), (
            f"config {idx} mismatch vs reference (max abs err {err})")

    print("KERNEL_OK")
</pallas_src>

<mosaic_0001>
module attributes {stable_mosaic.version = 11 : i64} {
  func.func @mlp_kernel(%arg0: i32, %arg1: i32, %arg2: memref<32x16xf32, #tpu.memory_space<vmem>>, %arg3: memref<16x32xf32, #tpu.memory_space<vmem>>, %arg4: memref<32x32xf32, #tpu.memory_space<vmem>>, %arg5: memref<32x10xf32, #tpu.memory_space<vmem>>, %arg6: memref<1x10xf32, #tpu.memory_space<vmem>>, %arg7: memref<6x32xf32, #tpu.memory_space<vmem>>, %arg8: memref<32x10xf32, #tpu.memory_space<vmem>>, %arg9: memref<6x32xf32, #tpu.memory_space<vmem>>, %arg10: memref<64x32xf32, #tpu.memory_space<vmem>>) attributes {dimension_semantics = [#tpu.dimension_semantics<arbitrary>, #tpu.dimension_semantics<arbitrary>], iteration_bounds = array<i64: 3, 2>, scalar_prefetch = 0 : i64, scratch_operands = 2 : i64, tpu.core_type = #tpu.core_type<tc>, window_params = [{transform_indices = @transform_0, window_bounds = array<i64: 32, 16>}, {pipeline_mode = #tpu.pipeline_mode<synchronous>, transform_indices = @transform_1, window_bounds = array<i64: 16, 32>}, {pipeline_mode = #tpu.pipeline_mode<synchronous>, transform_indices = @transform_2, window_bounds = array<i64: 32, 32>}, {pipeline_mode = #tpu.pipeline_mode<synchronous>, transform_indices = @transform_3, window_bounds = array<i64: 32, 10>}, {pipeline_mode = #tpu.pipeline_mode<synchronous>, transform_indices = @transform_4, window_bounds = array<i64: 1, 10>}, {pipeline_mode = #tpu.pipeline_mode<synchronous>, transform_indices = @transform_5, window_bounds = array<i64: 6, 32>}, {transform_indices = @transform_6, window_bounds = array<i64: 32, 10>}]} {
    %c32_i32 = arith.constant 32 : i32
    %0 = arith.muli %arg1, %c32_i32 : i32
    %1 = tpu.assume_multiple %0, 8 : i32
    %c0 = arith.constant 0 : index
    %c0_0 = arith.constant 0 : index
    %2 = vector.load %arg7[%c0, %c0_0] : memref<6x32xf32, #tpu.memory_space<vmem>>, vector<1x32xf32>
    %c1 = arith.constant 1 : index
    %c0_1 = arith.constant 0 : index
    %3 = vector.load %arg7[%c1, %c0_1] : memref<6x32xf32, #tpu.memory_space<vmem>>, vector<1x32xf32>
    %c2 = arith.constant 2 : index
    %c0_2 = arith.constant 0 : index
    %4 = vector.load %arg7[%c2, %c0_2] : memref<6x32xf32, #tpu.memory_space<vmem>>, vector<1x32xf32>
    %c3 = arith.constant 3 : index
    %c0_3 = arith.constant 0 : index
    %5 = vector.load %arg7[%c3, %c0_3] : memref<6x32xf32, #tpu.memory_space<vmem>>, vector<1x32xf32>
    %c4 = arith.constant 4 : index
    %c0_4 = arith.constant 0 : index
    %6 = vector.load %arg7[%c4, %c0_4] : memref<6x32xf32, #tpu.memory_space<vmem>>, vector<1x32xf32>
    %c5 = arith.constant 5 : index
    %c0_5 = arith.constant 0 : index
    %7 = vector.load %arg7[%c5, %c0_5] : memref<6x32xf32, #tpu.memory_space<vmem>>, vector<1x32xf32>
    %c0_i32 = arith.constant 0 : i32
    %8 = arith.cmpi eq, %arg0, %c0_i32 : i32
    %c0_i32_6 = arith.constant 0 : i32
    %9 = arith.cmpi eq, %arg1, %c0_i32_6 : i32
    %10 = arith.andi %8, %9 : i1
    %11 = arith.extui %10 : i1 to i32
    %c0_i32_7 = arith.constant 0 : i32
    %12 = arith.cmpi ne, %11, %c0_i32_7 : i32
    scf.if %12 {
      %cst = arith.constant 0.000000e+00 : f32
      %22 = vector.broadcast %cst : f32 to vector<6x32xf32>
      %c0_12 = arith.constant 0 : index
      %c0_13 = arith.constant 0 : index
      %23 = vector.load %arg9[%c0_12, %c0_13] : memref<6x32xf32, #tpu.memory_space<vmem>>, vector<6x32xf32>
      tpu.vector_store %arg9[%c0_12, %c0_13], %22 {strides = array<i32>} : memref<6x32xf32, #tpu.memory_space<vmem>>, vector<6x32xf32>,
    } else {
    }
    %c0_i32_8 = arith.constant 0 : i32
    %13 = arith.cmpi eq, %arg0, %c0_i32_8 : i32
    %14 = arith.extui %13 : i1 to i32
    %c0_i32_9 = arith.constant 0 : i32
    %15 = arith.cmpi ne, %14, %c0_i32_9 : i32
    scf.if %15 {
      %c0_12 = arith.constant 0 : index
      %c0_13 = arith.constant 0 : index
      %22 = vector.load %arg2[%c0_12, %c0_13] : memref<32x16xf32, #tpu.memory_space<vmem>>, vector<32x16xf32>
      %23 = arith.mulf %22, %22 : vector<32x16xf32>
      %cst = arith.constant dense<0.000000e+00> : vector<32xf32>
      %24 = vector.multi_reduction <add>, %23, %cst [1] : vector<32x16xf32> to vector<32xf32>
      %25 = vector.shape_cast %24 : vector<32xf32> to vector<32x1xf32>
      %cst_14 = arith.constant 1.000000e-24 : f32
      %26 = vector.broadcast %cst_14 : f32 to vector<32x1xf32>
      %27 = arith.maximumf %25, %26 : vector<32x1xf32>
      %28 = math.rsqrt %27 : vector<32x1xf32>
      %29 = vector.broadcast %28 : vector<32x1xf32> to vector<32x16xf32>
      %30 = arith.mulf %22, %29 : vector<32x16xf32>
      %c0_15 = arith.constant 0 : index
      %c0_16 = arith.constant 0 : index
      %31 = vector.load %arg3[%c0_15, %c0_16] : memref<16x32xf32, #tpu.memory_space<vmem>>, vector<16x32xf32>
      %cst_17 = arith.constant dense<0.000000e+00> : vector<32x32xf32>
      %32 = tpu.matmul %30, %31, %cst_17 {dimension_numbers = #tpu.dot_dimension_numbers<[1], [0], [0], [1], [0, 0, 1, 1], [], []>} : vector<32x16xf32>, vector<16x32xf32>, vector<32x32xf32> -> vector<32x32xf32>
      %33 = vector.broadcast %2 : vector<1x32xf32> to vector<32x32xf32>
      %34 = arith.addf %32, %33 : vector<32x32xf32>
      %c0_i32_18 = arith.constant 0 : i32
      %35 = arith.cmpi eq, %arg1, %c0_i32_18 : i32
      %36 = arith.extui %35 : i1 to i32
      %c0_i32_19 = arith.constant 0 : i32
      %37 = arith.cmpi ne, %36, %c0_i32_19 : i32
      scf.if %37 {
        %cst_33 = arith.constant dense<0.000000e+00> : vector<32xf32>
        %54 = vector.multi_reduction <add>, %34, %cst_33 [0] : vector<32x32xf32> to vector<32xf32>
        %55 = vector.shape_cast %54 : vector<32xf32> to vector<1x32xf32>
        %cst_34 = arith.constant 3.200000e+01 : f32
        %56 = vector.broadcast %cst_34 : f32 to vector<1x32xf32>
        %57 = arith.divf %55, %56 : vector<1x32xf32>
        %c0_35 = arith.constant 0 : index
        %c0_36 = arith.constant 0 : index
        %58 = vector.load %arg9[%c0_35, %c0_36] : memref<6x32xf32, #tpu.memory_space<vmem>>, vector<1x32xf32>
        tpu.vector_store %arg9[%c0_35, %c0_36], %57 {strides = array<i32>} : memref<6x32xf32, #tpu.memory_space<vmem>>, vector<1x32xf32>,
      } else {
      }
      %c0_20 = arith.constant 0 : index
      %c0_21 = arith.constant 0 : index
      %38 = vector.load %arg9[%c0_20, %c0_21] : memref<6x32xf32, #tpu.memory_space<vmem>>, vector<1x32xf32>
      %39 = vector.broadcast %38 : vector<1x32xf32> to vector<32x32xf32>
      %40 = arith.subf %34, %39 : vector<32x32xf32>
      %c1_22 = arith.constant 1 : index
      %c0_23 = arith.constant 0 : index
      %41 = vector.load %arg9[%c1_22, %c0_23] : memref<6x32xf32, #tpu.memory_space<vmem>>, vector<1x32xf32>
      %cst_24 = arith.constant dense<0.000000e+00> : vector<32xf32>
      %42 = vector.multi_reduction <add>, %40, %cst_24 [0] : vector<32x32xf32> to vector<32xf32>
      %43 = vector.shape_cast %42 : vector<32xf32> to vector<1x32xf32>
      %44 = arith.addf %41, %43 : vector<1x32xf32>
      %c1_25 = arith.constant 1 : index
      %c0_26 = arith.constant 0 : index
      %45 = vector.load %arg9[%c1_25, %c0_26] : memref<6x32xf32, #tpu.memory_space<vmem>>, vector<1x32xf32>
      tpu.vector_store %arg9[%c1_25, %c0_26], %44 {strides = array<i32>} : memref<6x32xf32, #tpu.memory_space<vmem>>, vector<1x32xf32>,
      %c2_27 = arith.constant 2 : index
      %c0_28 = arith.constant 0 : index
      %46 = vector.load %arg9[%c2_27, %c0_28] : memref<6x32xf32, #tpu.memory_space<vmem>>, vector<1x32xf32>
      %47 = arith.mulf %40, %40 : vector<32x32xf32>
      %cst_29 = arith.constant dense<0.000000e+00> : vector<32xf32>
      %48 = vector.multi_reduction <add>, %47, %cst_29 [0] : vector<32x32xf32> to vector<32xf32>
      %49 = vector.shape_cast %48 : vector<32xf32> to vector<1x32xf32>
      %50 = arith.addf %46, %49 : vector<1x32xf32>
      %c2_30 = arith.constant 2 : index
      %c0_31 = arith.constant 0 : index
      %51 = vector.load %arg9[%c2_30, %c0_31] : memref<6x32xf32, #tpu.memory_space<vmem>>, vector<1x32xf32>
      tpu.vector_store %arg9[%c2_30, %c0_31], %50 {strides = array<i32>} : memref<6x32xf32, #tpu.memory_space<vmem>>, vector<1x32xf32>,
      %52 = arith.index_cast %1 : i32 to index
      %c0_32 = arith.constant 0 : index
      %53 = vector.load %arg10[%52, %c0_32] : memref<64x32xf32, #tpu.memory_space<vmem>>, vector<32x32xf32>
      tpu.vector_store %arg10[%52, %c0_32], %34 {strides = array<i32>} : memref<64x32xf32, #tpu.memory_space<vmem>>, vector<32x32xf32>,
    } else {
    }
    %c1_i32 = arith.constant 1 : i32
    %16 = arith.cmpi eq, %arg0, %c1_i32 : i32
    %17 = arith.extui %16 : i1 to i32
    %c0_i32_10 = arith.constant 0 : i32
    %18 = arith.cmpi ne, %17, %c0_i32_10 : i32
    scf.if %18 {
      %22 = arith.index_cast %1 : i32 to index
      %c0_12 = arith.constant 0 : index
      %23 = vector.load %arg10[%22, %c0_12] : memref<64x32xf32, #tpu.memory_space<vmem>>, vector<32x32xf32>
      %c0_13 = arith.constant 0 : index
      %c0_14 = arith.constant 0 : index
      %24 = vector.load %arg9[%c0_13, %c0_14] : memref<6x32xf32, #tpu.memory_space<vmem>>, vector<1x32xf32>
      %c1_15 = arith.constant 1 : index
      %c0_16 = arith.constant 0 : index
      %25 = vector.load %arg9[%c1_15, %c0_16] : memref<6x32xf32, #tpu.memory_space<vmem>>, vector<1x32xf32>
      %cst = arith.constant 1.562500e-02 : f32
      %26 = vector.broadcast %cst : f32 to vector<1x32xf32>
      %27 = arith.mulf %25, %26 : vector<1x32xf32>
      %c2_17 = arith.constant 2 : index
      %c0_18 = arith.constant 0 : index
      %28 = vector.load %arg9[%c2_17, %c0_18] : memref<6x32xf32, #tpu.memory_space<vmem>>, vector<1x32xf32>
      %cst_19 = arith.constant 1.562500e-02 : f32
      %29 = vector.broadcast %cst_19 : f32 to vector<1x32xf32>
      %30 = arith.mulf %28, %29 : vector<1x32xf32>
      %31 = arith.addf %24, %27 : vector<1x32xf32>
      %32 = arith.mulf %27, %27 : vector<1x32xf32>
      %33 = arith.subf %30, %32 : vector<1x32xf32>
      %cst_20 = arith.constant 0.000000e+00 : f32
      %34 = vector.broadcast %cst_20 : f32 to vector<1x32xf32>
      %35 = arith.maximumf %33, %34 : vector<1x32xf32>
      %36 = vector.broadcast %31 : vector<1x32xf32> to vector<32x32xf32>
      %37 = arith.subf %23, %36 : vector<32x32xf32>
      %cst_21 = arith.constant 9.99999974E-6 : f32
      %38 = vector.broadcast %cst_21 : f32 to vector<1x32xf32>
      %39 = arith.addf %35, %38 : vector<1x32xf32>
      %40 = math.rsqrt %39 : vector<1x32xf32>
      %41 = vector.broadcast %40 : vector<1x32xf32> to vector<32x32xf32>
      %42 = arith.mulf %37, %41 : vector<32x32xf32>
      %43 = vector.broadcast %3 : vector<1x32xf32> to vector<32x32xf32>
      %44 = arith.mulf %42, %43 : vector<32x32xf32>
      %45 = vector.broadcast %4 : vector<1x32xf32> to vector<32x32xf32>
      %46 = arith.addf %44, %45 : vector<32x32xf32>
      %cst_22 = arith.constant 0.000000e+00 : f32
      %47 = vector.broadcast %cst_22 : f32 to vector<32x32xf32>
      %48 = arith.cmpf oge, %46, %47 : vector<32x32xf32>
      %cst_23 = arith.constant 0.00999999977 : f32
      %49 = vector.broadcast %cst_23 : f32 to vector<32x32xf32>
      %50 = arith.mulf %49, %46 : vector<32x32xf32>
      %51 = arith.select %48, %46, %50 : vector<32x32xi1>, vector<32x32xf32>
      %c0_24 = arith.constant 0 : index
      %c0_25 = arith.constant 0 : index
      %52 = vector.load %arg4[%c0_24, %c0_25] : memref<32x32xf32, #tpu.memory_space<vmem>>, vector<32x32xf32>
      %cst_26 = arith.constant dense<0.000000e+00> : vector<32x32xf32>
      %53 = tpu.matmul %51, %52, %cst_26 {dimension_numbers = #tpu.dot_dimension_numbers<[1], [0], [0], [1], [0, 0, 1, 1], [], []>} : vector<32x32xf32>, vector<32x32xf32>, vector<32x32xf32> -> vector<32x32xf32>
      %54 = vector.broadcast %5 : vector<1x32xf32> to vector<32x32xf32>
      %55 = arith.addf %53, %54 : vector<32x32xf32>
      %c0_i32_27 = arith.constant 0 : i32
      %56 = arith.cmpi eq, %arg1, %c0_i32_27 : i32
      %57 = arith.extui %56 : i1 to i32
      %c0_i32_28 = arith.constant 0 : i32
      %58 = arith.cmpi ne, %57, %c0_i32_28 : i32
      scf.if %58 {
        %cst_42 = arith.constant dense<0.000000e+00> : vector<32xf32>
        %75 = vector.multi_reduction <add>, %55, %cst_42 [0] : vector<32x32xf32> to vector<32xf32>
        %76 = vector.shape_cast %75 : vector<32xf32> to vector<1x32xf32>
        %cst_43 = arith.constant 3.200000e+01 : f32
        %77 = vector.broadcast %cst_43 : f32 to vector<1x32xf32>
        %78 = arith.divf %76, %77 : vector<1x32xf32>
        %c3_44 = arith.constant 3 : index
        %c0_45 = arith.constant 0 : index
        %79 = vector.load %arg9[%c3_44, %c0_45] : memref<6x32xf32, #tpu.memory_space<vmem>>, vector<1x32xf32>
        tpu.vector_store %arg9[%c3_44, %c0_45], %78 {strides = array<i32>} : memref<6x32xf32, #tpu.memory_space<vmem>>, vector<1x32xf32>,
      } else {
      }
      %c3_29 = arith.constant 3 : index
      %c0_30 = arith.constant 0 : index
      %59 = vector.load %arg9[%c3_29, %c0_30] : memref<6x32xf32, #tpu.memory_space<vmem>>, vector<1x32xf32>
      %60 = vector.broadcast %59 : vector<1x32xf32> to vector<32x32xf32>
      %61 = arith.subf %55, %60 : vector<32x32xf32>
      %c4_31 = arith.constant 4 : index
      %c0_32 = arith.constant 0 : index
      %62 = vector.load %arg9[%c4_31, %c0_32] : memref<6x32xf32, #tpu.memory_space<vmem>>, vector<1x32xf32>
      %cst_33 = arith.constant dense<0.000000e+00> : vector<32xf32>
      %63 = vector.multi_reduction <add>, %61, %cst_33 [0] : vector<32x32xf32> to vector<32xf32>
      %64 = vector.shape_cast %63 : vector<32xf32> to vector<1x32xf32>
      %65 = arith.addf %62, %64 : vector<1x32xf32>
      %c4_34 = arith.constant 4 : index
      %c0_35 = arith.constant 0 : index
      %66 = vector.load %arg9[%c4_34, %c0_35] : memref<6x32xf32, #tpu.memory_space<vmem>>, vector<1x32xf32>
      tpu.vector_store %arg9[%c4_34, %c0_35], %65 {strides = array<i32>} : memref<6x32xf32, #tpu.memory_space<vmem>>, vector<1x32xf32>,
      %c5_36 = arith.constant 5 : index
      %c0_37 = arith.constant 0 : index
      %67 = vector.load %arg9[%c5_36, %c0_37] : memref<6x32xf32, #tpu.memory_space<vmem>>, vector<1x32xf32>
      %68 = arith.mulf %61, %61 : vector<32x32xf32>
      %cst_38 = arith.constant dense<0.000000e+00> : vector<32xf32>
      %69 = vector.multi_reduction <add>, %68, %cst_38 [0] : vector<32x32xf32> to vector<32xf32>
      %70 = vector.shape_cast %69 : vector<32xf32> to vector<1x32xf32>
      %71 = arith.addf %67, %70 : vector<1x32xf32>
      %c5_39 = arith.constant 5 : index
      %c0_40 = arith.constant 0 : index
      %72 = vector.load %arg9[%c5_39, %c0_40] : memref<6x32xf32, #tpu.memory_space<vmem>>, vector<1x32xf32>
      tpu.vector_store %arg9[%c5_39, %c0_40], %71 {strides = array<i32>} : memref<6x32xf32, #tpu.memory_space<vmem>>, vector<1x32xf32>,
      %73 = arith.index_cast %1 : i32 to index
      %c0_41 = arith.constant 0 : index
      %74 = vector.load %arg10[%73, %c0_41] : memref<64x32xf32, #tpu.memory_space<vmem>>, vector<32x32xf32>
      tpu.vector_store %arg10[%73, %c0_41], %55 {strides = array<i32>} : memref<64x32xf32, #tpu.memory_space<vmem>>, vector<32x32xf32>,
    } else {
    }
    %c2_i32 = arith.constant 2 : i32
    %19 = arith.cmpi eq, %arg0, %c2_i32 : i32
    %20 = arith.extui %19 : i1 to i32
    %c0_i32_11 = arith.constant 0 : i32
    %21 = arith.cmpi ne, %20, %c0_i32_11 : i32
    scf.if %21 {
      %22 = arith.index_cast %1 : i32 to index
      %c0_12 = arith.constant 0 : index
      %23 = vector.load %arg10[%22, %c0_12] : memref<64x32xf32, #tpu.memory_space<vmem>>, vector<32x32xf32>
      %c3_13 = arith.constant 3 : index
      %c0_14 = arith.constant 0 : index
      %24 = vector.load %arg9[%c3_13, %c0_14] : memref<6x32xf32, #tpu.memory_space<vmem>>, vector<1x32xf32>
      %c4_15 = arith.constant 4 : index
      %c0_16 = arith.constant 0 : index
      %25 = vector.load %arg9[%c4_15, %c0_16] : memref<6x32xf32, #tpu.memory_space<vmem>>, vector<1x32xf32>
      %cst = arith.constant 1.562500e-02 : f32
      %26 = vector.broadcast %cst : f32 to vector<1x32xf32>
      %27 = arith.mulf %25, %26 : vector<1x32xf32>
      %c5_17 = arith.constant 5 : index
      %c0_18 = arith.constant 0 : index
      %28 = vector.load %arg9[%c5_17, %c0_18] : memref<6x32xf32, #tpu.memory_space<vmem>>, vector<1x32xf32>
      %cst_19 = arith.constant 1.562500e-02 : f32
      %29 = vector.broadcast %cst_19 : f32 to vector<1x32xf32>
      %30 = arith.mulf %28, %29 : vector<1x32xf32>
      %31 = arith.addf %24, %27 : vector<1x32xf32>
      %32 = arith.mulf %27, %27 : vector<1x32xf32>
      %33 = arith.subf %30, %32 : vector<1x32xf32>
      %cst_20 = arith.constant 0.000000e+00 : f32
      %34 = vector.broadcast %cst_20 : f32 to vector<1x32xf32>
      %35 = arith.maximumf %33, %34 : vector<1x32xf32>
      %36 = vector.broadcast %31 : vector<1x32xf32> to vector<32x32xf32>
      %37 = arith.subf %23, %36 : vector<32x32xf32>
      %cst_21 = arith.constant 9.99999974E-6 : f32
      %38 = vector.broadcast %cst_21 : f32 to vector<1x32xf32>
      %39 = arith.addf %35, %38 : vector<1x32xf32>
      %40 = math.rsqrt %39 : vector<1x32xf32>
      %41 = vector.broadcast %40 : vector<1x32xf32> to vector<32x32xf32>
      %42 = arith.mulf %37, %41 : vector<32x32xf32>
      %43 = vector.broadcast %6 : vector<1x32xf32> to vector<32x32xf32>
      %44 = arith.mulf %42, %43 : vector<32x32xf32>
      %45 = vector.broadcast %7 : vector<1x32xf32> to vector<32x32xf32>
      %46 = arith.addf %44, %45 : vector<32x32xf32>
      %cst_22 = arith.constant 0.000000e+00 : f32
      %47 = vector.broadcast %cst_22 : f32 to vector<32x32xf32>
      %48 = arith.cmpf oge, %46, %47 : vector<32x32xf32>
      %cst_23 = arith.constant 0.00999999977 : f32
      %49 = vector.broadcast %cst_23 : f32 to vector<32x32xf32>
      %50 = arith.mulf %49, %46 : vector<32x32xf32>
      %51 = arith.select %48, %46, %50 : vector<32x32xi1>, vector<32x32xf32>
      %c0_24 = arith.constant 0 : index
      %c0_25 = arith.constant 0 : index
      %52 = vector.load %arg5[%c0_24, %c0_25] : memref<32x10xf32, #tpu.memory_space<vmem>>, vector<32x10xf32>
      %cst_26 = arith.constant dense<0.000000e+00> : vector<32x10xf32>
      %53 = tpu.matmul %51, %52, %cst_26 {dimension_numbers = #tpu.dot_dimension_numbers<[1], [0], [0], [1], [0, 0, 1, 1], [], []>} : vector<32x32xf32>, vector<32x10xf32>, vector<32x10xf32> -> vector<32x10xf32>
      %c0_27 = arith.constant 0 : index
      %c0_28 = arith.constant 0 : index
      %54 = vector.load %arg6[%c0_27, %c0_28] : memref<1x10xf32, #tpu.memory_space<vmem>>, vector<1x10xf32>
      %55 = vector.broadcast %54 : vector<1x10xf32> to vector<32x10xf32>
      %56 = arith.addf %53, %55 : vector<32x10xf32>
      %cst_29 = arith.constant dense<0xFF800000> : vector<32xf32>
      %57 = vector.multi_reduction <maximumf>, %56, %cst_29 [1] : vector<32x10xf32> to vector<32xf32>
      %58 = vector.shape_cast %57 : vector<32xf32> to vector<32x1xf32>
      %59 = vector.broadcast %58 : vector<32x1xf32> to vector<32x10xf32>
      %60 = arith.subf %56, %59 : vector<32x10xf32>
      %61 = math.exp %60 : vector<32x10xf32>
      %cst_30 = arith.constant dense<0.000000e+00> : vector<32xf32>
      %62 = vector.multi_reduction <add>, %61, %cst_30 [1] : vector<32x10xf32> to vector<32xf32>
      %63 = vector.shape_cast %62 : vector<32xf32> to vector<32x1xf32>
      %64 = tpu.reciprocal %63 {approx = true} : vector<32x1xf32> -> vector<32x1xf32>
      %65 = vector.broadcast %64 : vector<32x1xf32> to vector<32x10xf32>
      %66 = arith.mulf %61, %65 : vector<32x10xf32>
      %c0_31 = arith.constant 0 : index
      %c0_32 = arith.constant 0 : index
      %67 = vector.load %arg8[%c0_31, %c0_32] : memref<32x10xf32, #tpu.memory_space<vmem>>, vector<32x10xf32>
      tpu.vector_store %arg8[%c0_31, %c0_32], %66 {strides = array<i32>} : memref<32x10xf32, #tpu.memory_space<vmem>>, vector<32x10xf32>,
    } else {
    }
    return
  }
  func.func @transform_0(%arg0: i32, %arg1: i32) -> (i32, i32) {
    %c0_i32 = arith.constant 0 : i32
    %0 = arith.cmpi eq, %arg0, %c0_i32 : i32
    %c0_i32_0 = arith.constant 0 : i32
    %1 = arith.select %0, %arg1, %c0_i32_0 : i32
    %c0_i32_1 = arith.constant 0 : i32
    %c0_i32_2 = arith.constant 0 : i32
    return %1, %c0_i32_1 : i32, i32
  }
  func.func @transform_1(%arg0: i32, %arg1: i32) -> (i32, i32) {
    %c0_i32 = arith.constant 0 : i32
    %c0_i32_0 = arith.constant 0 : i32
    %c0_i32_1 = arith.constant 0 : i32
    return %c0_i32, %c0_i32_0 : i32, i32
  }
  func.func @transform_2(%arg0: i32, %arg1: i32) -> (i32, i32) {
    %c0_i32 = arith.constant 0 : i32
    %c0_i32_0 = arith.constant 0 : i32
    %c0_i32_1 = arith.constant 0 : i32
    return %c0_i32, %c0_i32_0 : i32, i32
  }
  func.func @transform_3(%arg0: i32, %arg1: i32) -> (i32, i32) {
    %c0_i32 = arith.constant 0 : i32
    %c0_i32_0 = arith.constant 0 : i32
    %c0_i32_1 = arith.constant 0 : i32
    return %c0_i32, %c0_i32_0 : i32, i32
  }
  func.func @transform_4(%arg0: i32, %arg1: i32) -> (i32, i32) {
    %c0_i32 = arith.constant 0 : i32
    %c0_i32_0 = arith.constant 0 : i32
    %c0_i32_1 = arith.constant 0 : i32
    return %c0_i32, %c0_i32_0 : i32, i32
  }
  func.func @transform_5(%arg0: i32, %arg1: i32) -> (i32, i32) {
    %c0_i32 = arith.constant 0 : i32
    %c0_i32_0 = arith.constant 0 : i32
    %c0_i32_1 = arith.constant 0 : i32
    return %c0_i32, %c0_i32_0 : i32, i32
  }
  func.func @transform_6(%arg0: i32, %arg1: i32) -> (i32, i32) {
    %c2_i32 = arith.constant 2 : i32
    %0 = arith.cmpi slt, %arg0, %c2_i32 : i32
    %c0_i32 = arith.constant 0 : i32
    %1 = arith.select %0, %c0_i32, %arg1 : i32
    %c0_i32_0 = arith.constant 0 : i32
    %c0_i32_1 = arith.constant 0 : i32
    return %1, %c0_i32_0 : i32, i32
  }
}

</mosaic_0001>

<bundles_post_ra>
// kernel: tpu_custom_call.1
= control target key start
LH: loop header
LB: loop body
LE: loop exit
PB: predicated region body
PF: predicated region fallthrough
CT: control target
= control target key end

     0   :  { %s1333_s21 = smov 0   ;;  %s1335_s22 = smov 0   ;;  %s1567_s0 = inlined_call_operand.vmem [shape: f32[64,16], index: 0, kind: input, shape index: {}]   ;;  %s1568_s1 = inlined_call_operand.vmem [shape: f32[16,32], index: 1, kind: input, shape index: {}]   ;;  %s1569_s2 = inlined_call_operand.vmem [shape: f32[32,32], index: 2, kind: input, shape index: {}]   ;;  %s1570_s3 = inlined_call_operand.vmem [shape: f32[32,10], index: 3, kind: input, shape index: {}]   ;;  %s1571_s4 = inlined_call_operand.vmem [shape: f32[1,10], index: 4, kind: input, shape index: {}]   ;;  %s1572_s5 = inlined_call_operand.vmem [shape: f32[6,32], index: 5, kind: input, shape index: {}]   ;;  %s1573_s6 = inlined_call_operand.vmem [shape: f32[64,10], index: 6, kind: output, shape index: {}]  }
   0x1   :  { %s1337_s23 = smov 0   ;;  %s1339_s24 = smov 0  }
   0x2   :  { %s1341_s25 = smov 0  }
   0x3 LB: > { %s25_s26 = sadd.s32 1, %s1287_s23  ;;  %s28_s27 = sadd.s32 1, %s1291_s24  ;;  %s1295_s25 = sphi %s1341_s25, %s16_s25   ;;  %s1291_s24 = sphi %s1339_s24, %s1577_s24   ;;  %s1287_s23 = sphi %s1337_s23, %s1576_s23   ;;  %s1283_s22 = sphi %s1335_s22, %s1575_s22   ;;  %s1279_s21 = sphi %s1333_s21, %s1574_s21  }
   0x4   : > { %p26_p0 = scmp.ge.s32.totalorder %s25_s26, 2  ;;  %p1064_p1 = scmp.ge.s32.totalorder %s1295_s25, 1 }
   0x5   : > { %p237_p2 = scmp.lt.s32.totalorder %s1295_s25, 7 }
   0x6   : > { %s1579_s26 = smov (%p26_p0, %s25_s26), 0  ;;  %s1581_s27 = smov (!%p26_p0, %s28_s27), %s1291_s24 }
   0x7   : > { %p238_p3 = pnand %p1064_p1, %p237_p2  ;;  %p30_p4 = scmp.ge.s32.totalorder %s1581_s27, 3 }
   0x8   : > { %p271_p5 = scmp.eq.s32.totalorder (!%p238_p3), %s1283_s22, 0  ;;  %p281_p6 = scmp.lt.s32.totalorder (!%p238_p3), %s1283_s22, 2  ;;  %v1372_v0 = vld [vmem:[%s1572_s5] ss:$0 sm:$0xff] (!%p238_p3)  ;;  %v1377_v1 = vld [vmem:[%s1572_s5 + $0x1] ss:$0 sm:$0xff] (!%p238_p3) }
   0x9   : > { %s1583_s27 = smov (%p30_p4, %s1581_s27), 0  ;;  %241 = sbr.rel (%p238_p3) target bundleno = 1346 (0x542), region = 44 }
   0xa   : > { %s1380_s8 = sshll.u32 (!%p238_p3), %s1279_s21, 5  ;;  %v1385_v2 = vld [vmem:[%s1572_s5 + $0x2] ss:$0 sm:$0xff] (!%p238_p3)  ;;  %v1390_v3 = vld [vmem:[%s1572_s5 + $0x3] ss:$0 sm:$0xff] (!%p238_p3)  ;;  %p299_p7 = scmp.eq.s32.totalorder (!%p238_p3), %s1279_s21, 0 }
   0xb   : > { %v1399_v4 = vld [vmem:[%s1572_s5 + $0x4] ss:$0 sm:$0xff] (!%p238_p3)  ;;  %v1404_v5 = vld [vmem:[%s1572_s5 + $0x5] ss:$0 sm:$0xff] (!%p238_p3) }
   0xc   : > { %p300_p8 = pnand (!%p238_p3), %p299_p7, %p271_p5 }
  0x10   : > { %s272_s13 = scalar_select %p271_p5, %s1279_s21, 0 }
  0x11   : > { %s282_s18 = scalar_select %p281_p6, 0, %s1279_s21 }
  0x12   : > { %s1065_s19 = sshll.u32 %s272_s13, 2  ;;  %303 = sbr.rel (%p300_p8) target bundleno = 25 (0x19), region = 48  ;;  %vm304_vm0 = vcmask (!%p300_p8), 259072   ;;  %v1297_v6 = vmov (!%p300_p8), 0.0  }
  0x13   : > { %p274_p9 = scmp.lt.s32.totalorder %s1065_s19, 7  ;;  %s1067_s20 = sshll.u32 %s282_s18, 2  ;;  %305 = vst.msk [vmem:[#allocation2] sm:$0x3f] (!%p300_p8), %vm304_vm0, %v1297_v6 }
  0x14   : > { %p284_p10 = scmp.lt.s32.totalorder %s1067_s20, 7 }
  0x15   : > { %s1585_s19 = smov (!%p274_p9, %s1065_s19), 7 }
  0x16   : > { %s1587_s20 = smov (!%p284_p10, %s1067_s20), 7  ;;  %s1066_s28 = sshll.u32 %s1585_s19, 3 }
  0x17   : > { %s277_s7 = scalar_lea.vmem %s1567_s0, %s1066_s28  ;;  %s1068_s9 = sshll.u32 %s1587_s20, 3 }
  0x18   : > { %s1415_s12 = scalar_lea.vmem %s1573_s6, %s1068_s9 }
  0x19 PF: > { %p1070_p11 = scmp.ne.s32.totalorder %s1283_s22, 0 }
  0x1a   : > { %v309_v7 = vld [vmem:[%s277_s7] sm:$0xff] (!%p1070_p11)  ;;  %vm317_vm1 = vcmask (!%p1070_p11), 130048   ;;  %v310_v8 = vld [vmem:[%s277_s7 + $0x8] sm:$0xff] (!%p1070_p11)  ;;  %v311_v9 = vld [vmem:[%s277_s7 + $0x10] sm:$0xff] (!%p1070_p11)  ;;  %p1076_p12 = scmp.ne.s32.totalorder (!%p1070_p11), %s1279_s21, 0 }
  0x1b   : > { %308 = sbr.rel (%p1070_p11) target bundleno = 461 (0x1cd), region = 52  ;;  %v313_v10 = vmul.f32 (!%p1070_p11), %v309_v7, %v309_v7  ;;  %v314_v11 = vmul.f32 (!%p1070_p11), %v310_v8, %v310_v8  ;;  %v315_v12 = vmul.f32 (!%p1070_p11), %v311_v9, %v311_v9  ;;  %v312_v13 = vld [vmem:[%s277_s7 + $0x18] sm:$0xff] (!%p1070_p11)  ;;  %v342_v19 = vld [vmem:[%s1568_s1] sm:$0xff] (!%p1070_p11)  ;;  %v343_v20 = vld [vmem:[%s1568_s1 + $0x8] sm:$0xff] (!%p1070_p11) }
  0x1c   : > { %v316_v14 = vmul.f32 (!%p1070_p11), %v312_v13, %v312_v13  ;;  %v1158_v21 = vpack.c.bf16 (!%p1070_p11), %v343_v20, %v342_v19 }
  0x1d   : > { %v318_v15 = vsel (!%p1070_p11), %vm317_vm1, %v313_v10, 0.0  ;;  %v321_v16 = vsel (!%p1070_p11), %vm317_vm1, %v314_v11, 0.0  ;;  %v324_v17 = vsel (!%p1070_p11), %vm317_vm1, %v315_v12, 0.0 }
  0x1e   : > { %319 = vadd.xlane.f32.xlu0 (!%p1070_p11), %v318_v15  ;;  %322 = vadd.xlane.f32.xlu1 (!%p1070_p11), %v321_v16  ;;  %v327_v18 = vsel (!%p1070_p11), %vm317_vm1, %v316_v14, 0.0 }
  0x1f   : > { %1159 = vmatprep.subr.bf16.mxu0 (!%p1070_p11), %v1158_v21  ;;  %1178 = vmatprep.subr.bf16.mxu1 (!%p1070_p11), %v1158_v21 }
  0x20   : > { %1161 = vmatpush3.bf16.msra.mxu0 (!%p1070_p11), %v1158_v21  ;;  %1179 = vmatpush3.bf16.msra.mxu1 (!%p1070_p11), %v1158_v21 }
  0x22   : > { %325 = vadd.xlane.f32.xlu0 %v324_v17  ;;  %328 = vadd.xlane.f32.xlu1 %v327_v18  ;;  %vm448_vm2 = vcmask (!%p1076_p12), 261120   ;;  %vm464_vm3 = vcmask (!%p1076_p12), 253952  }
  0xab   : > { %v320_v22 = vpop.xlane.xlu0 %319  ;;  %v323_v23 = vpop.xlane.xlu1 %322 }
  0xac   : > { %v330_v24 = vmax.f32 %v320_v22, 1e-24  ;;  %v331_v25 = vmax.f32 %v323_v23, 1e-24 }
  0xae   : > { %1229 = vrsqrt.f32 %v330_v24 }
  0xaf   : > { %1231 = vrsqrt.f32 %v331_v25  ;;  %v326_v26 = vpop.xlane.xlu0 %325  ;;  %v329_v27 = vpop.xlane.xlu1 %328 }
  0xb0   : > { %v332_v28 = vmax.f32 %v326_v26, 1e-24  ;;  %v333_v29 = vmax.f32 %v329_v27, 1e-24 }
  0xb2   : > { %1233 = vrsqrt.f32 %v332_v28 }
  0xb3   : > { %1235 = vrsqrt.f32 %v333_v29 }
  0xb8   : > { %v1230_v30 = vpop.eup %1229 }
  0xb9   : > { %v1232_v31 = vpop.eup %1231  ;;  %v338_v32 = vmul.f32 %v1230_v30, %v309_v7 }
  0xba   : > { %v339_v33 = vmul.f32 %v1232_v31, %v310_v8 }
  0xbb   : > { %1124 = vmatprep.mubr.msk.f32.mxu0 %vm317_vm1, %v338_v32 }
  0xbc   : > { %v1234_v34 = vpop.eup %1233  ;;  %1125 = vmatmul.mubr.msk.f32.vlgmr.msra.gmra.mrb[0].mxu0 %vm317_vm1, %v339_v33 }
  0xbd   : > { %v1236_v35 = vpop.eup %1235  ;;  %v340_v36 = vmul.f32 %v1234_v34, %v311_v9 }
  0xbe   : > { %v341_v37 = vmul.f32 %v1236_v35, %v312_v13 }
  0xbf   : > { %1127 = vmatprep.mubr.msk.f32.mxu1 %vm317_vm1, %v340_v36 }
  0xc0   : > { %1128 = vmatmul.mubr.msk.f32.vlgmr.msra.gmra.mrb[0].mxu1 %vm317_vm1, %v341_v37 }
 0x18f   : > { %v1126_v38 = vpop.f32.mrb[0].mxu0  ;;  %447 = sbr.rel (%p1076_p12) target bundleno = 427 (0x1ab), region = 56 }
 0x190   : > { %v432_v39 = vadd.f32 %v1126_v38, %v1372_v0  ;;  %v426_v40 = vpop.f32.mrb[1].mxu0 }
 0x191   : > { %v427_v41 = vadd.f32 %v1372_v0, %v426_v40 }
 0x192   : > { %v450_v47 = vsel (!%p1076_p12), %vm448_vm2, %v432_v39, 0.0 }
 0x193   : > { %v1129_v42 = vpop.f32.mrb[0].mxu1  ;;  %v449_v46 = vsel (!%p1076_p12), %vm448_vm2, %v427_v41, 0.0 }
 0x194   : > { %v442_v43 = vadd.f32 %v1129_v42, %v1372_v0  ;;  %v436_v44 = vpop.f32.mrb[1].mxu1  ;;  %v451_v49 = vadd.f32 (!%p1076_p12), %v450_v47, %v449_v46 }
 0x195   : > { %v437_v45 = vadd.f32 %v1372_v0, %v436_v44 }
 0x196   : > { %v454_v50 = vsel %vm448_vm2, %v442_v43, 0.0 }
 0x197   : > { %v452_v48 = vsel %vm448_vm2, %v437_v45, 0.0 }
 0x198   : > { %v453_v51 = vadd.f32 %v452_v48, %v451_v49 }
 0x19a   : > { %v455_v52 = vadd.f32 %v454_v50, %v453_v51 }
 0x19c   : > { %v456_v53 = vrot.slane %v455_v52, 4 }
 0x19e   : > { %v457_v54 = vadd.f32 %v456_v53, %v455_v52 }
 0x1a0   : > { %v458_v55 = vrot.slane %v457_v54, 2 }
 0x1a2   : > { %v459_v56 = vadd.f32 %v458_v55, %v457_v54 }
 0x1a4   : > { %v460_v57 = vrot.slane %v459_v56, 1 }
 0x1a6   : > { %v461_v58 = vadd.f32 %v460_v57, %v459_v56 }
 0x1a8   : > { %v463_v59 = vmul.f32 0.03125, %v461_v58 }
 0x1aa   : > { %465 = vst.msk [vmem:[#allocation2] sm:$0x1] %vm464_vm3, %v463_v59 }
 0x1ab PF: > { %vm476_vm4 = vcmask 261120   ;;  %s513_s17 = scalar_lea.vmem [#allocation3], %s1380_s8  ;;  %v475_v32 = vld [vmem:[#allocation2 + $0x1] sm:$0x1]  ;;  %vm491_vm5 = vcmask 253952  }
 0x1ac   : > { %514 = vst.msk [vmem:[%s513_s17] sm:$0xff] %vm476_vm4, %v427_v41  ;;  %515 = vst.msk [vmem:[%s513_s17 + $0x8] sm:$0xff] %vm476_vm4, %v432_v39  ;;  %v493_v37 = vld [vmem:[#allocation2 + $0x2] sm:$0x1] }
 0x1ad   : > { %516 = vst.msk [vmem:[%s513_s17 + $0x10] sm:$0xff] %vm476_vm4, %v437_v45  ;;  %517 = vst.msk [vmem:[%s513_s17 + $0x18] sm:$0xff] %vm476_vm4, %v442_v43 }
 0x1b1   : > { %v1077_v60 = vld [vmem:[#allocation2] ss:$0 sm:$0xff] }
 0x1b2   : > { %v471_v61 = vsub.f32 %v427_v41, %v1077_v60  ;;  %v472_v62 = vsub.f32 %v432_v39, %v1077_v60  ;;  %v473_v63 = vsub.f32 %v437_v45, %v1077_v60  ;;  %v474_v0 = vsub.f32 %v442_v43, %v1077_v60 }
 0x1b4   : > { %v477_v6 = vsel %vm476_vm4, %v471_v61, 0.0  ;;  %v478_v7 = vsel %vm476_vm4, %v472_v62, 0.0  ;;  %v480_v8 = vsel %vm476_vm4, %v473_v63, 0.0  ;;  %v494_v10 = vmul.f32 %v471_v61, %v471_v61 }
 0x1b5   : > { %v479_v9 = vadd.f32 %v478_v7, %v477_v6  ;;  %v495_v11 = vmul.f32 %v472_v62, %v472_v62  ;;  %v496_v12 = vmul.f32 %v473_v63, %v473_v63  ;;  %v482_v13 = vsel %vm476_vm4, %v474_v0, 0.0 }
 0x1b6   : > { %v497_v14 = vmul.f32 %v474_v0, %v474_v0  ;;  %v498_v16 = vsel %vm476_vm4, %v494_v10, 0.0 }
 0x1b7   : > { %v481_v15 = vadd.f32 %v480_v8, %v479_v9  ;;  %v499_v17 = vsel %vm476_vm4, %v495_v11, 0.0  ;;  %v501_v18 = vsel %vm476_vm4, %v496_v12, 0.0 }
 0x1b8   : > { %v500_v19 = vadd.f32 %v499_v17, %v498_v16  ;;  %v503_v21 = vsel %vm476_vm4, %v497_v14, 0.0 }
 0x1b9   : > { %v483_v20 = vadd.f32 %v482_v13, %v481_v15 }
 0x1ba   : > { %v502_v22 = vadd.f32 %v501_v18, %v500_v19 }
 0x1bb   : > { %v484_v23 = vrot.slane %v483_v20, 4 }
 0x1bc   : > { %v504_v24 = vadd.f32 %v503_v21, %v502_v22 }
 0x1bd   : > { %v485_v25 = vadd.f32 %v484_v23, %v483_v20 }
 0x1be   : > { %v505_v26 = vrot.slane %v504_v24, 4 }
 0x1bf   : > { %v486_v27 = vrot.slane %v485_v25, 2 }
 0x1c0   : > { %v506_v28 = vadd.f32 %v505_v26, %v504_v24 }
 0x1c1   : > { %v487_v29 = vadd.f32 %v486_v27, %v485_v25 }
 0x1c2   : > { %v507_v30 = vrot.slane %v506_v28, 2 }
 0x1c3   : > { %v488_v31 = vrot.slane %v487_v29, 1 }
 0x1c4   : > { %v508_v33 = vadd.f32 %v507_v30, %v506_v28 }
 0x1c5   : > { %v489_v34 = vadd.f32 %v488_v31, %v487_v29 }
 0x1c6   : > { %v509_v35 = vrot.slane %v508_v33, 1 }
 0x1c7   : > { %v490_v36 = vadd.f32 %v489_v34, %v475_v32 }
 0x1c8   : > { %v510_v38 = vadd.f32 %v509_v35, %v508_v33 }
 0x1c9   : > { %492 = vst.msk [vmem:[#allocation2 + $0x1] sm:$0x1] %vm491_vm5, %v490_v36 }
 0x1ca   : > { %v511_v39 = vadd.f32 %v510_v38, %v493_v37 }
 0x1cc   : > { %512 = vst.msk [vmem:[#allocation2 + $0x2] sm:$0x1] %vm491_vm5, %v511_v39 }
 0x1cd PF: > { %p1078_p13 = scmp.ne.s32.totalorder %s1283_s22, 1 }
 0x1ce   : > { %v582_v40 = vld [vmem:[%s1569_s2] sm:$0xff] (!%p1078_p13)  ;;  %v583_v41 = vld [vmem:[%s1569_s2 + $0x8] sm:$0xff] (!%p1078_p13)  ;;  %v584_v42 = vld [vmem:[%s1569_s2 + $0x10] sm:$0xff] (!%p1078_p13)  ;;  %v536_v51 = vlaneseq (!%p1078_p13)  ;;  %s1464_s10 = scalar_lea.vmem (!%p1078_p13), [#allocation3], %s1380_s8  ;;  %vm590_vm6 = vcmask (!%p1078_p13), 261120   ;;  %p1086_p0 = scmp.ne.s32.totalorder (!%p1078_p13), %s1279_s21, 0 }
 0x1cf   : > { %521 = sbr.rel (%p1078_p13) target bundleno = 770 (0x302), region = 60  ;;  %v1162_v43 = vpack.c.bf16 (!%p1078_p13), %v583_v41, %v582_v40  ;;  %v585_v44 = vld [vmem:[%s1569_s2 + $0x18] sm:$0xff] (!%p1078_p13)  ;;  %v527_v55 = vld [vmem:[#allocation2] sm:$0x1] (!%p1078_p13)  ;;  %v525_v61 = vld [vmem:[%s1464_s10 + $0x10] sm:$0xff] (!%p1078_p13) }
 0x1d0   : > { %v1166_v45 = vpack.c.bf16 (!%p1078_p13), %v585_v44, %v584_v42  ;;  %v528_v46 = vld [vmem:[#allocation2 + $0x1] sm:$0x1] (!%p1078_p13)  ;;  %v537_v54 = vshrl.u32 (!%p1078_p13), %v536_v51, 7  ;;  %v524_v62 = vld [vmem:[%s1464_s10 + $0x8] sm:$0xff] (!%p1078_p13)  ;;  %v526_v63 = vld [vmem:[%s1464_s10 + $0x18] sm:$0xff] (!%p1078_p13) }
 0x1d1   : > { %1163 = vmatprep.subr.bf16.mxu0 (!%p1078_p13), %v1162_v43  ;;  %1180 = vmatprep.subr.bf16.mxu1 (!%p1078_p13), %v1162_v43  ;;  %v529_v48 = vmul.f32 (!%p1078_p13), 0.015625, %v528_v46  ;;  %v523_v59 = vld [vmem:[%s1464_s10] sm:$0xff] (!%p1078_p13) }
 0x1d2   : > { %1165 = vmatpush3.bf16.msra.mxu0 (!%p1078_p13), %v1162_v43  ;;  %1182 = vmatpush3.bf16.msra.mxu1 (!%p1078_p13), %v1162_v43  ;;  %v538_v58 = vsub.s32 (!%p1078_p13), 0, %v537_v54 }
 0x1d3   : > { %v530_v47 = vld [vmem:[#allocation2 + $0x2] sm:$0x1] (!%p1078_p13)  ;;  %1167 = vmatprep.subr.bf16.mxu0 (!%p1078_p13), %v1166_v45  ;;  %1181 = vmatprep.subr.bf16.mxu1 (!%p1078_p13), %v1166_v45  ;;  %v533_v50 = vmul.f32 (!%p1078_p13), %v529_v48, %v529_v48  ;;  %v532_v57 = vadd.f32 (!%p1078_p13), %v529_v48, %v527_v55 }
 0x1d4   : > { %v531_v49 = vmul.f32 (!%p1078_p13), 0.015625, %v530_v47 }
 0x1d5   : > { %v539_v60 = vrot.slane (!%p1078_p13), %v532_v57, %v538_v58 }
 0x1d6   : > { %v534_v52 = vsub.f32 %v531_v49, %v533_v50  ;;  %1169 = vmatpush3.bf16.msra.mxu0 %v1166_v45  ;;  %1183 = vmatpush3.bf16.msra.mxu1 %v1166_v45  ;;  %vm706_vm11 = vcmask (!%p1086_p0), 253952  }
 0x1d7   : > { %v540_v0 = vsub.f32 %v523_v59, %v539_v60  ;;  %v542_v6 = vsub.f32 %v525_v61, %v539_v60  ;;  %v541_v7 = vsub.f32 %v524_v62, %v539_v60  ;;  %v543_v8 = vsub.f32 %v526_v63, %v539_v60 }
 0x1d8   : > { %v535_v53 = vmax.f32 %v534_v52, 0.0 }
 0x1da   : > { %v544_v56 = vadd.f32 1e-05, %v535_v53 }
 0x1dc   : > { %1237 = vrsqrt.f32 %v544_v56 }
 0x1e6   : > { %v1238_v9 = vpop.eup %1237 }
 0x1e7   : > { %v549_v10 = vrot.slane %v1238_v9, %v538_v58 }
 0x1e9   : > { %v550_v11 = vmul.f32 %v549_v10, %v540_v0  ;;  %v552_v12 = vmul.f32 %v549_v10, %v542_v6  ;;  %v551_v13 = vmul.f32 %v549_v10, %v541_v7  ;;  %v553_v14 = vmul.f32 %v549_v10, %v543_v8 }
 0x1eb   : > { %v558_v15 = vmul.f32 %v1377_v1, %v550_v11  ;;  %v560_v16 = vmul.f32 %v1377_v1, %v552_v12  ;;  %v559_v17 = vmul.f32 %v1377_v1, %v551_v13  ;;  %v561_v18 = vmul.f32 %v1377_v1, %v553_v14 }
 0x1ed   : > { %v566_v19 = vadd.f32 %v1385_v2, %v558_v15  ;;  %v568_v20 = vadd.f32 %v1385_v2, %v560_v16  ;;  %v567_v21 = vadd.f32 %v1385_v2, %v559_v17  ;;  %v569_v22 = vadd.f32 %v1385_v2, %v561_v18 }
 0x1ef   : > { %vm570_vm7 = vcmp.ge.f32.partialorder %v566_v19, 0.0  ;;  %v574_v23 = vmul.f32 0.01, %v566_v19  ;;  %vm572_vm8 = vcmp.ge.f32.partialorder %v568_v20, 0.0  ;;  %v576_v24 = vmul.f32 0.01, %v568_v20 }
 0x1f0   : > { %vm571_vm9 = vcmp.ge.f32.partialorder %v567_v21, 0.0  ;;  %v575_v25 = vmul.f32 0.01, %v567_v21  ;;  %vm573_vm10 = vcmp.ge.f32.partialorder %v569_v22, 0.0  ;;  %v577_v26 = vmul.f32 0.01, %v569_v22 }
 0x1f1   : > { %v578_v27 = vsel %vm570_vm7, %v566_v19, %v574_v23  ;;  %v580_v28 = vsel %vm572_vm8, %v568_v20, %v576_v24 }
 0x1f2   : > { %1138 = vmatprep.mubr.msk.f32.mxu0 %vm590_vm6, %v578_v27  ;;  %1141 = vmatprep.mubr.msk.f32.mxu1 %vm590_vm6, %v580_v28  ;;  %v579_v1 = vsel %vm571_vm9, %v567_v21, %v575_v25  ;;  %v581_v29 = vsel %vm573_vm10, %v569_v22, %v577_v26 }
 0x1f3   : > { %1139 = vmatmul.mubr.msk.f32.vlgmr.msra.gmra.mrb[0].mxu0 %vm590_vm6, %v579_v1  ;;  %1142 = vmatmul.mubr.msk.f32.vlgmr.msra.gmra.mrb[0].mxu1 %vm590_vm6, %v581_v29 }
 0x2c2   : > { %690 = sbr.rel (%p1086_p0) target bundleno = 736 (0x2e0), region = 64 }
 0x2c6   : > { %v1140_v2 = vpop.f32.mrb[0].mxu0  ;;  %v1143_v30 = vpop.f32.mrb[0].mxu1 }
 0x2c7   : > { %v675_v31 = vadd.f32 %v1140_v2, %v1390_v3  ;;  %v685_v32 = vadd.f32 %v1143_v30, %v1390_v3  ;;  %v669_v33 = vpop.f32.mrb[1].mxu0  ;;  %v679_v34 = vpop.f32.mrb[1].mxu1 }
 0x2c8   : > { %v670_v35 = vadd.f32 %v1390_v3, %v669_v33  ;;  %v680_v36 = vadd.f32 %v1390_v3, %v679_v34 }
 0x2c9   : > { %v692_v38 = vsel %vm590_vm6, %v675_v31, 0.0  ;;  %v696_v41 = vsel %vm590_vm6, %v685_v32, 0.0 }
 0x2ca   : > { %v691_v37 = vsel %vm590_vm6, %v670_v35, 0.0  ;;  %v694_v39 = vsel %vm590_vm6, %v680_v36, 0.0 }
 0x2cb   : > { %v693_v40 = vadd.f32 %v692_v38, %v691_v37 }
 0x2cd   : > { %v695_v42 = vadd.f32 %v694_v39, %v693_v40 }
 0x2cf   : > { %v697_v43 = vadd.f32 %v696_v41, %v695_v42 }
 0x2d1   : > { %v698_v44 = vrot.slane %v697_v43, 4 }
 0x2d3   : > { %v699_v45 = vadd.f32 %v698_v44, %v697_v43 }
 0x2d5   : > { %v700_v46 = vrot.slane %v699_v45, 2 }
 0x2d7   : > { %v701_v47 = vadd.f32 %v700_v46, %v699_v45 }
 0x2d9   : > { %v702_v48 = vrot.slane %v701_v47, 1 }
 0x2db   : > { %v703_v3 = vadd.f32 %v702_v48, %v701_v47 }
 0x2dd   : > { %v705_v49 = vmul.f32 0.03125, %v703_v3 }
 0x2df   : > { %707 = vst.msk [vmem:[#allocation2 + $0x3] sm:$0x1] %vm706_vm11, %v705_v49 }
 0x2e0 PF: > { %754 = vst.msk [vmem:[%s1464_s10] sm:$0xff] %vm590_vm6, %v670_v35  ;;  %755 = vst.msk [vmem:[%s1464_s10 + $0x8] sm:$0xff] %vm590_vm6, %v675_v31  ;;  %v717_v22 = vld [vmem:[#allocation2 + $0x4] sm:$0x1]  ;;  %vm732_vm12 = vcmask 253952  }
 0x2e1   : > { %756 = vst.msk [vmem:[%s1464_s10 + $0x10] sm:$0xff] %vm590_vm6, %v680_v36  ;;  %757 = vst.msk [vmem:[%s1464_s10 + $0x18] sm:$0xff] %vm590_vm6, %v685_v32  ;;  %v734_v27 = vld [vmem:[#allocation2 + $0x5] sm:$0x1] }
 0x2e6   : > { %v1087_v50 = vld [vmem:[#allocation2 + $0x3] ss:$0 sm:$0xff] }
 0x2e7   : > { %v713_v51 = vsub.f32 %v670_v35, %v1087_v50  ;;  %v714_v52 = vsub.f32 %v675_v31, %v1087_v50  ;;  %v715_v53 = vsub.f32 %v680_v36, %v1087_v50  ;;  %v716_v54 = vsub.f32 %v685_v32, %v1087_v50 }
 0x2e9   : > { %v718_v55 = vsel %vm590_vm6, %v713_v51, 0.0  ;;  %v719_v56 = vsel %vm590_vm6, %v714_v52, 0.0  ;;  %v721_v57 = vsel %vm590_vm6, %v715_v53, 0.0  ;;  %v735_v59 = vmul.f32 %v713_v51, %v713_v51 }
 0x2ea   : > { %v720_v58 = vadd.f32 %v719_v56, %v718_v55  ;;  %v736_v60 = vmul.f32 %v714_v52, %v714_v52  ;;  %v737_v61 = vmul.f32 %v715_v53, %v715_v53  ;;  %v723_v62 = vsel %vm590_vm6, %v716_v54, 0.0 }
 0x2eb   : > { %v738_v63 = vmul.f32 %v716_v54, %v716_v54  ;;  %v739_v6 = vsel %vm590_vm6, %v735_v59, 0.0 }
 0x2ec   : > { %v722_v0 = vadd.f32 %v721_v57, %v720_v58  ;;  %v740_v7 = vsel %vm590_vm6, %v736_v60, 0.0  ;;  %v742_v8 = vsel %vm590_vm6, %v737_v61, 0.0 }
 0x2ed   : > { %v741_v9 = vadd.f32 %v740_v7, %v739_v6  ;;  %v744_v11 = vsel %vm590_vm6, %v738_v63, 0.0 }
 0x2ee   : > { %v724_v10 = vadd.f32 %v723_v62, %v722_v0 }
 0x2ef   : > { %v743_v12 = vadd.f32 %v742_v8, %v741_v9 }
 0x2f0   : > { %v725_v13 = vrot.slane %v724_v10, 4 }
 0x2f1   : > { %v745_v14 = vadd.f32 %v744_v11, %v743_v12 }
 0x2f2   : > { %v726_v15 = vadd.f32 %v725_v13, %v724_v10 }
 0x2f3   : > { %v746_v16 = vrot.slane %v745_v14, 4 }
 0x2f4   : > { %v727_v17 = vrot.slane %v726_v15, 2 }
 0x2f5   : > { %v747_v18 = vadd.f32 %v746_v16, %v745_v14 }
 0x2f6   : > { %v728_v19 = vadd.f32 %v727_v17, %v726_v15 }
 0x2f7   : > { %v748_v20 = vrot.slane %v747_v18, 2 }
 0x2f8   : > { %v729_v21 = vrot.slane %v728_v19, 1 }
 0x2f9   : > { %v749_v23 = vadd.f32 %v748_v20, %v747_v18 }
 0x2fa   : > { %v730_v24 = vadd.f32 %v729_v21, %v728_v19 }
 0x2fb   : > { %v750_v25 = vrot.slane %v749_v23, 1 }
 0x2fc   : > { %v731_v26 = vadd.f32 %v730_v24, %v717_v22 }
 0x2fd   : > { %v751_v28 = vadd.f32 %v750_v25, %v749_v23 }
 0x2fe   : > { %733 = vst.msk [vmem:[#allocation2 + $0x4] sm:$0x1] %vm732_vm12, %v731_v26 }
 0x2ff   : > { %v752_v1 = vadd.f32 %v751_v28, %v734_v27 }
 0x301   : > { %753 = vst.msk [vmem:[#allocation2 + $0x5] sm:$0x1] %vm732_vm12, %v752_v1 }
 0x302 PF: > { %p1088_p1 = scmp.ne.s32.totalorder %s1283_s22, 2 }
 0x303   : > { %v822_v29 = vld [vmem:[%s1570_s3] sm:$0xff] (!%p1088_p1)  ;;  %v823_v2 = vld [vmem:[%s1570_s3 + $0x8] sm:$0xff] (!%p1088_p1)  ;;  %v824_v30 = vld [vmem:[%s1570_s3 + $0x10] sm:$0xff] (!%p1088_p1)  ;;  %v776_v39 = vlaneseq (!%p1088_p1)  ;;  %s762_s22 = scalar_lea.vmem (!%p1088_p1), [#allocation3], %s1380_s8  ;;  %vm833_vm13 = vcmask (!%p1088_p1), 261120   ;;  %vm931_vm2 = vcmask (!%p1088_p1), 80896  }
 0x304   : > { %761 = sbr.rel (%p1088_p1) target bundleno = 1346 (0x542), region = 68  ;;  %v1170_v31 = vpack.c.bf16 (!%p1088_p1), %v823_v2, %v822_v29  ;;  %v825_v32 = vld [vmem:[%s1570_s3 + $0x18] sm:$0xff] (!%p1088_p1)  ;;  %v767_v43 = vld [vmem:[#allocation2 + $0x3] sm:$0x1] (!%p1088_p1)  ;;  %v765_v3 = vld [vmem:[%s762_s22 + $0x10] sm:$0xff] (!%p1088_p1) }
 0x305   : > { %v1174_v33 = vpack.c.bf16 (!%p1088_p1), %v825_v32, %v824_v30  ;;  %v768_v34 = vld [vmem:[#allocation2 + $0x4] sm:$0x1] (!%p1088_p1)  ;;  %v777_v42 = vshrl.u32 (!%p1088_p1), %v776_v39, 7  ;;  %v764_v49 = vld [vmem:[%s762_s22 + $0x8] sm:$0xff] (!%p1088_p1)  ;;  %v766_v50 = vld [vmem:[%s762_s22 + $0x18] sm:$0xff] (!%p1088_p1) }
 0x306   : > { %1171 = vmatprep.subr.bf16.mxu0 (!%p1088_p1), %v1170_v31  ;;  %1184 = vmatprep.subr.bf16.mxu1 (!%p1088_p1), %v1170_v31  ;;  %v769_v36 = vmul.f32 (!%p1088_p1), 0.015625, %v768_v34  ;;  %v763_v47 = vld [vmem:[%s762_s22] sm:$0xff] (!%p1088_p1) }
 0x307   : > { %1173 = vmatpush3.bf16.msra.mxu0 (!%p1088_p1), %v1170_v31  ;;  %1186 = vmatpush3.bf16.msra.mxu1 (!%p1088_p1), %v1170_v31  ;;  %v778_v46 = vsub.s32 (!%p1088_p1), 0, %v777_v42 }
 0x308   : > { %v770_v35 = vld [vmem:[#allocation2 + $0x5] sm:$0x1] (!%p1088_p1)  ;;  %1175 = vmatprep.subr.bf16.mxu0 (!%p1088_p1), %v1174_v33  ;;  %1185 = vmatprep.subr.bf16.mxu1 (!%p1088_p1), %v1174_v33  ;;  %v773_v38 = vmul.f32 (!%p1088_p1), %v769_v36, %v769_v36  ;;  %v772_v45 = vadd.f32 (!%p1088_p1), %v769_v36, %v767_v43 }
 0x309   : > { %v771_v37 = vmul.f32 (!%p1088_p1), 0.015625, %v770_v35 }
 0x30a   : > { %v779_v48 = vrot.slane (!%p1088_p1), %v772_v45, %v778_v46 }
 0x30b   : > { %v774_v40 = vsub.f32 %v771_v37, %v773_v38  ;;  %1177 = vmatpush3.bf16.msra.mxu0 %v1174_v33  ;;  %1187 = vmatpush3.bf16.msra.mxu1 %v1174_v33 }
 0x30c   : > { %v780_v51 = vsub.f32 %v763_v47, %v779_v48  ;;  %v782_v52 = vsub.f32 %v765_v3, %v779_v48  ;;  %v781_v53 = vsub.f32 %v764_v49, %v779_v48  ;;  %v783_v54 = vsub.f32 %v766_v50, %v779_v48 }
 0x30d   : > { %v775_v41 = vmax.f32 %v774_v40, 0.0 }
 0x30f   : > { %v784_v44 = vadd.f32 1e-05, %v775_v41 }
 0x311   : > { %1239 = vrsqrt.f32 %v784_v44 }
 0x31b   : > { %v1240_v55 = vpop.eup %1239 }
 0x31c   : > { %v789_v56 = vrot.slane %v1240_v55, %v778_v46 }
 0x31e   : > { %v790_v57 = vmul.f32 %v789_v56, %v780_v51  ;;  %v792_v58 = vmul.f32 %v789_v56, %v782_v52  ;;  %v791_v59 = vmul.f32 %v789_v56, %v781_v53  ;;  %v793_v60 = vmul.f32 %v789_v56, %v783_v54 }
 0x320   : > { %v798_v61 = vmul.f32 %v1399_v4, %v790_v57  ;;  %v800_v62 = vmul.f32 %v1399_v4, %v792_v58  ;;  %v799_v63 = vmul.f32 %v1399_v4, %v791_v59  ;;  %v801_v0 = vmul.f32 %v1399_v4, %v793_v60 }
 0x322   : > { %v806_v6 = vadd.f32 %v1404_v5, %v798_v61  ;;  %v808_v7 = vadd.f32 %v1404_v5, %v800_v62  ;;  %v807_v8 = vadd.f32 %v1404_v5, %v799_v63  ;;  %v809_v9 = vadd.f32 %v1404_v5, %v801_v0  ;;  %v1091_v5 = vld [vmem:[%s1571_s4] ss:$0 sm:$0xff] }
 0x324   : > { %vm810_vm14 = vcmp.ge.f32.partialorder %v806_v6, 0.0  ;;  %v814_v10 = vmul.f32 0.01, %v806_v6  ;;  %vm812_vm15 = vcmp.ge.f32.partialorder %v808_v7, 0.0  ;;  %v816_v11 = vmul.f32 0.01, %v808_v7 }
 0x325   : > { %vm811_vm0 = vcmp.ge.f32.partialorder %v807_v8, 0.0  ;;  %v815_v12 = vmul.f32 0.01, %v807_v8  ;;  %vm813_vm1 = vcmp.ge.f32.partialorder %v809_v9, 0.0  ;;  %v817_v13 = vmul.f32 0.01, %v809_v9 }
 0x326   : > { %v818_v14 = vsel %vm810_vm14, %v806_v6, %v814_v10  ;;  %v820_v15 = vsel %vm812_vm15, %v808_v7, %v816_v11 }
 0x327   : > { %1152 = vmatprep.mubr.msk.f32.mxu0 %vm833_vm13, %v818_v14  ;;  %1155 = vmatprep.mubr.msk.f32.mxu1 %vm833_vm13, %v820_v15  ;;  %v819_v4 = vsel %vm811_vm0, %v807_v8, %v815_v12  ;;  %v821_v16 = vsel %vm813_vm1, %v809_v9, %v817_v13 }
 0x328   : > { %1153 = vmatmul.mubr.msk.f32.vlgmr.msra.gmra.mrb[0].mxu0 %vm833_vm13, %v819_v4  ;;  %1156 = vmatmul.mubr.msk.f32.vlgmr.msra.gmra.mrb[0].mxu1 %vm833_vm13, %v821_v16 }
 0x3fb   : > { %v1154_v17 = vpop.f32.mrb[0].mxu0  ;;  %v1157_v18 = vpop.f32.mrb[0].mxu1 }
 0x3fc   : > { %v912_v19 = vpop.f32.mrb[1].mxu0  ;;  %v922_v20 = vpop.f32.mrb[1].mxu1  ;;  %v928_v21 = vadd.f32 %v1157_v18, %v1091_v5  ;;  %v918_v24 = vadd.f32 %v1154_v17, %v1091_v5 }
 0x3fd   : > { %v913_v22 = vadd.f32 %v1091_v5, %v912_v19  ;;  %v923_v23 = vadd.f32 %v1091_v5, %v922_v20 }
 0x3fe   : > { %v941_v27 = vsel %vm931_vm2, %v928_v21, -inf  ;;  %v935_v28 = vsel %vm931_vm2, %v918_v24, -inf }
 0x3ff   : > { %v938_v25 = vsel %vm931_vm2, %v923_v23, -inf  ;;  %v932_v26 = vsel %vm931_vm2, %v913_v22, -inf }
 0x400   : > { %939 = vmax.xlane.f32.xlu1 %v938_v25  ;;  %933 = vmax.xlane.f32.xlu0 %v932_v26 }
 0x404   : > { %942 = vmax.xlane.f32.xlu1 %v941_v27  ;;  %936 = vmax.xlane.f32.xlu0 %v935_v28 }
 0x48d   : > { %v940_v1 = vpop.xlane.xlu1 %939  ;;  %v934_v29 = vpop.xlane.xlu0 %933 }
 0x48e   : > { %v946_v2 = vsub.f32 %v923_v23, %v940_v1  ;;  %v944_v30 = vsub.f32 %v913_v22, %v934_v29 }
 0x490   : > { %v948_v31 = vmul.f32 1.442695, %v944_v30  ;;  %v952_v32 = vmul.f32 1.442695, %v946_v2 }
 0x491   : > { %v943_v33 = vpop.xlane.xlu1 %942  ;;  %v937_v34 = vpop.xlane.xlu0 %936 }
 0x492   : > { %v947_v35 = vsub.f32 %v928_v21, %v943_v33  ;;  %v945_v36 = vsub.f32 %v918_v24, %v937_v34  ;;  %1241 = vpow2.f32 %v948_v31 }
 0x493   : > { %1243 = vpow2.f32 %v952_v32 }
 0x494   : > { %v950_v37 = vmul.f32 1.442695, %v945_v36  ;;  %v954_v38 = vmul.f32 1.442695, %v947_v35 }
 0x496   : > { %1245 = vpow2.f32 %v950_v37 }
 0x497   : > { %1247 = vpow2.f32 %v954_v38 }
 0x49c   : > { %v1242_v39 = vpop.eup %1241 }
 0x49d   : > { %v956_v40 = vsel %vm931_vm2, %v1242_v39, 0.0  ;;  %v1244_v41 = vpop.eup %1243 }
 0x49e   : > { %957 = vadd.xlane.f32.xlu0 %v956_v40  ;;  %v962_v43 = vsel %vm931_vm2, %v1244_v41, 0.0 }
 0x4a0   : > { %v1246_v42 = vpop.eup %1245 }
 0x4a1   : > { %v959_v44 = vsel %vm931_vm2, %v1246_v42, 0.0  ;;  %v1248_v45 = vpop.eup %1247 }
 0x4a2   : > { %963 = vadd.xlane.f32.xlu0 %v962_v43  ;;  %960 = vadd.xlane.f32.xlu1 %v959_v44  ;;  %v965_v46 = vsel %vm931_vm2, %v1248_v45, 0.0 }
 0x4a6   : > { %966 = vadd.xlane.f32.xlu1 %v965_v46 }
 0x52b   : > { %v958_v47 = vpop.xlane.xlu0 %957 }
 0x52c   : > { %1249 = vrcp.f32 %v958_v47 }
 0x52f   : > { %v961_v48 = vpop.xlane.xlu1 %960  ;;  %v964_v3 = vpop.xlane.xlu0 %963 }
 0x530   : > { %1251 = vrcp.f32 %v961_v48 }
 0x531   : > { %1253 = vrcp.f32 %v964_v3 }
 0x533   : > { %v967_v49 = vpop.xlane.xlu1 %966 }
 0x534   : > { %1255 = vrcp.f32 %v967_v49 }
 0x536   : > { %v1250_v50 = vpop.eup %1249 }
 0x537   : > { %v972_v51 = vmul.f32 %v1250_v50, %v1242_v39 }
 0x539   : > { %976 = vst.msk [vmem:[%s1415_s12] sm:$0xff] %vm931_vm2, %v972_v51 }
 0x53a   : > { %v1252_v52 = vpop.eup %1251 }
 0x53b   : > { %v1254_v53 = vpop.eup %1253  ;;  %v973_v54 = vmul.f32 %v1252_v52, %v1246_v42 }
 0x53c   : > { %v974_v55 = vmul.f32 %v1254_v53, %v1244_v41 }
 0x53d   : > { %977 = vst.msk [vmem:[%s1415_s12 + $0x8] sm:$0xff] %vm931_vm2, %v973_v54 }
 0x53e   : > { %v1256_v56 = vpop.eup %1255  ;;  %978 = vst.msk [vmem:[%s1415_s12 + $0x10] sm:$0xff] %vm931_vm2, %v974_v55 }
 0x53f   : > { %v975_v57 = vmul.f32 %v1256_v56, %v1248_v45 }
 0x541   : > { %979 = vst.msk [vmem:[%s1415_s12 + $0x18] sm:$0xff] %vm931_vm2, %v975_v57 }
 0x542 PF: > { %s16_s25 = sadd.s32 1, %s1295_s25   ;;  %s1574_s21 = smov %s1287_s23 }
 0x543   : > { %p13_p2 = scmp.ge.s32.totalorder %s16_s25, 8   ;;  %s1575_s22 = smov %s1291_s24 }
 0x544   : > { %s1576_s23 = smov %s1579_s26  ;;  %s1577_s24 = smov %s1583_s27 }
 0x545   :  { %15 = sbr.rel (!%p13_p2) target bundleno = 3 (0x3), region = 101 }

</bundles_post_ra>
